<compile_context>
chip_gen: v6e
topology: v6e:2x2x1
jax: 0.10.0
libtpu: 0.0.40
codegen_flags: <defaults>
</compile_context>

<pallas_src>
import math
from functools import partial

import jax
import jax.numpy as jnp
from jax.experimental import pallas as pl
from jax.experimental.pallas import tpu as pltpu


# ----------------------------------------------------------------------------------
# Kernel: one grid step handles pair blocks t and t + (bn/2)/tp (sharing one dt block).
# ----------------------------------------------------------------------------------
def _mamba_kernel(xz1_ref, xz2_ref, xpair_ref,
                  win_ref, cw1_ref, cw2_ref, bias_e_ref, bias_o_ref,
                  wxdt_ref, bdt_ref, wout_ref, bout_ref,
                  o_ref, *, tp, dm, compute_dtype):
    cd = compute_dtype
    f32 = jnp.float32

    # ---- in_proj on the stacked z-path rows (pair blocks t and t + half/tp) --------------
    xz = jnp.concatenate([xz1_ref[...], xz2_ref[...]], axis=0)            # (2tp, dm)
    zin = jnp.dot(xz, win_ref[...], preferred_element_type=f32)           # (2tp, 2dm)
    # degenerate depthwise conv: two affine taps (conv/in_proj biases pre-fused)
    z_e = zin * cw2_ref[...] + bias_e_ref[...]                            # even output rows
    z_o = zin * cw1_ref[...] + bias_o_ref[...]                            # odd output rows

    # ---- dt path (shared by both pair blocks, computed once) -----------------------------
    xp = xpair_ref[...]                                                   # (tp, 2dm) = [x[2j] | x[2j+1]]
    xd = jnp.concatenate([xp[:, :dm], xp[:, dm:]], axis=0)                # (2tp, dm): [x_even ; x_odd]
    dt_pre = jnp.dot(xd, wxdt_ref[...], preferred_element_type=f32) + bdt_ref[...]
    # F.softplus (beta=1, threshold=20)
    dt = jnp.where(dt_pre > 20.0, dt_pre,
                   jnp.log1p(jnp.exp(jnp.minimum(dt_pre, 20.0))))         # (2tp, dm)
    dt_e2 = jnp.concatenate([dt[:tp], dt[:tp]], axis=-1)                  # dt.repeat(1,2), even rows
    dt_o2 = jnp.concatenate([dt[tp:], dt[tp:]], axis=-1)                  # odd rows

    # ---- gate + out_proj: all four (even/odd x pair-block) streams in one MXU issue -------
    gate = jnp.concatenate([dt_e2, dt_e2, dt_o2, dt_o2], axis=0)          # (4tp, 2dm)
    zall = jnp.concatenate([z_e, z_o], axis=0)                            # (4tp, 2dm): [ze1;ze2;zo1;zo2]
    g = (zall * gate).astype(cd)
    y = jnp.dot(g, wout_ref[...], preferred_element_type=f32) + bout_ref[...]   # (4tp, dm)
    y = y.astype(o_ref.dtype)

    # pairs-on-lanes slabs: row j = [out_row_2j | out_row_2j+1]
    o_ref[0] = jnp.concatenate([y[0 * tp:1 * tp], y[2 * tp:3 * tp]], axis=-1)   # pair block t
    o_ref[1] = jnp.concatenate([y[1 * tp:2 * tp], y[3 * tp:4 * tp]], axis=-1)   # pair block t + half/tp


# ----------------------------------------------------------------------------------
# Helpers
# ----------------------------------------------------------------------------------
def _default_compute_dtype():
    try:
        kind = jax.devices()[0].device_kind.lower()
    except Exception:
        return jnp.float32
    if any(tag in kind for tag in ("v6", "v7", "7x")):
        return jnp.bfloat16          # native bf16 VPU + 256-wide MXU: bf16 operands by default
    return jnp.float32


def _choose_pair_tile(half, dm, act_bytes, target_pairs, vmem_budget):
    """Largest multiple-of-8 divisor of `half` that is <= target_pairs and fits the budget."""
    def step_bytes(tp):
        row_tiles = 2 * (2 * tp * dm + tp * 2 * dm) * act_bytes          # double-buffered x tiles
        out_tiles = 2 * (2 * tp * 2 * dm) * 4                            # double-buffered f32 output
        weights = 2 * (dm * 2 * dm + dm * dm + 2 * dm * dm) * act_bytes + 2 * 8 * 2 * dm * 4
        return row_tiles + out_tiles + weights

    best = 8
    cand = 8
    limit = min(half, target_pairs)
    while cand <= limit:
        if half % cand == 0 and step_bytes(cand) <= vmem_budget:
            best = cand
        cand += 8
    return best


# ----------------------------------------------------------------------------------
# Wrapper
# ----------------------------------------------------------------------------------
def mamba_block(x, params, *, compute_dtype=None, target_pairs=256,
                vmem_budget_bytes=40 * 1024 * 1024):
    if x.ndim == 1:
        x = x[None, :]
    bn, dm = x.shape
    assert params['win'].shape == (dm, 2 * dm)
    # TODO(synk): the reference dt plumbing is defined mod bn, so the batch cannot be zero-padded;
    #             this tiled kernel supports bn % 16 == 0 only (other sizes unsupported).
    assert bn % 16 == 0, "mamba_block Pallas kernel requires bn % 16 == 0"

    cd = compute_dtype if compute_dtype is not None else _default_compute_dtype()
    f32 = jnp.float32
    half = bn // 2

    # ---- one-time weight prep (wrapper-side fusion / casting) -----------------------------
    conv_w = params['conv_w']                        # (2dm, d_conv) depthwise taps
    cw1 = conv_w[:, 1][None, :].astype(f32)          # tap used by conv output position 1 (odd rows)
    cw2 = conv_w[:, 2][None, :].astype(f32)          # tap used by conv output position 0 (even rows)
    bin_ = params['bin'][None, :].astype(f32)
    cb = params['conv_b'][None, :].astype(f32)
    bias_e = bin_ * cw2 + cb                         # fused in_proj + conv bias (even rows)
    bias_o = bin_ * cw1 + cb                         # fused in_proj + conv bias (odd rows)
    wxdt = (params['wx'].astype(f32) @ params['wdt'].astype(f32)).astype(cd)   # pre-fused dt chain
    bdt = params['bdt'][None, :].astype(f32)
    bout = params['bout'][None, :].astype(f32)
    win = params['win'].astype(cd)
    wout = params['wout'].astype(cd)

    x_cd = x.astype(cd)
    x_pair = x_cd.reshape(half, 2 * dm)              # FREE row-major view: row i = [x[2i] | x[2i+1]]

    # ---- tile choice ------------------------------------------------------------------------
    act_bytes = jnp.dtype(cd).itemsize
    tp = _choose_pair_tile(half, dm, act_bytes, target_pairs, vmem_budget_bytes)
    if half // tp == 1 and (half // 2) % 8 == 0:
        tp = half // 2                               # >=2 grid steps so both v7x TensorCores work
    n_half_blocks = half // tp
    grid = (n_half_blocks,)

    wmap = lambda t: (0, 0)
    in_specs = [
        pl.BlockSpec((tp, dm), lambda t: (t, 0)),                          # x rows, first-half pairs
        pl.BlockSpec((tp, dm), lambda t, n=n_half_blocks: (t + n, 0)),     # x rows, second-half pairs
        pl.BlockSpec((tp, 2 * dm), lambda t: (t, 0)),                      # [x[2j] | x[2j+1]] (dt path)
        pl.BlockSpec(win.shape, wmap),
        pl.BlockSpec(cw1.shape, wmap),
        pl.BlockSpec(cw2.shape, wmap),
        pl.BlockSpec(bias_e.shape, wmap),
        pl.BlockSpec(bias_o.shape, wmap),
        pl.BlockSpec(wxdt.shape, wmap),
        pl.BlockSpec(bdt.shape, wmap),
        pl.BlockSpec(wout.shape, wmap),
        pl.BlockSpec(bout.shape, wmap),
    ]

    out_pairs = pl.pallas_call(
        partial(_mamba_kernel, tp=tp, dm=dm, compute_dtype=cd),
        out_shape=jax.ShapeDtypeStruct((2, half, 2 * dm), jnp.float32),
        grid=grid,
        in_specs=in_specs,
        out_specs=pl.BlockSpec((2, tp, 2 * dm), lambda t: (0, t, 0)),
        compiler_params=pltpu.CompilerParams(
            dimension_semantics=("parallel",),
            vmem_limit_bytes=48 * 1024 * 1024,
        ),
    )(x_cd, x_cd, x_pair,
      win, cw1, cw2, bias_e, bias_o, wxdt, bdt, wout, bout)

    # (2, bn/2, 2dm) -> (2bn, dm): pure row-major reshape restoring the reference row order.
    return out_pairs.reshape(2 * bn, dm)


# ----------------------------------------------------------------------------------
# Pure-JAX reference (mirrors the PyTorch forward exactly) for correctness checking.
# ----------------------------------------------------------------------------------
def mamba_block_ref(x, p):
    if x.ndim == 1:
        x = x[None, :]
    bn, dm = x.shape
    z = x @ p['win'] + p['bin']                                   # in_proj
    z0 = z * p['conv_w'][:, 2] + p['conv_b']                      # conv1d output position 0
    z1 = z * p['conv_w'][:, 1] + p['conv_b']                      # conv1d output position 1
    zi = jnp.stack([z0, z1], axis=1).reshape(2 * bn, 2 * dm)      # permute + reshape row order
    dt = jax.nn.softplus(x @ p['wx'] @ p['wdt'] + p['bdt'])
    dt = jnp.concatenate([dt, dt], axis=0)                        # dt.repeat(2, 1)
    dt = jnp.concatenate([dt, dt], axis=1)                        # dt.repeat(1, 2)
    return (zi * dt) @ p['wout'] + p['bout']                      # out_proj


if __name__ == "__main__":
    key = jax.random.PRNGKey(0)
    d_model, d_state, d_conv, expand = 64, 16, 4, 2
    bn = 64                        # e.g. 4 point clouds x 16 sampled points -> 64 feature rows
    two = expand * d_model

    ks = jax.random.split(key, 10)
    s = 0.1
    x = jax.random.normal(ks[0], (bn, d_model), jnp.float32)
    params = dict(
        win=s * jax.random.normal(ks[1], (d_model, two), jnp.float32),
        bin=s * jax.random.normal(ks[2], (two,), jnp.float32),
        conv_w=s * jax.random.normal(ks[3], (two, d_conv), jnp.float32),   # depthwise Conv1d taps
        conv_b=s * jax.random.normal(ks[4], (two,), jnp.float32),
        wx=s * jax.random.normal(ks[5], (d_model, d_state + d_conv), jnp.float32),
        wdt=s * jax.random.normal(ks[6], (d_state + d_conv, d_model), jnp.float32),
        bdt=s * jax.random.normal(ks[7], (d_model,), jnp.float32),
        wout=s * jax.random.normal(ks[8], (two, d_model), jnp.float32),
        bout=s * jax.random.normal(ks[9], (d_model,), jnp.float32),
    )

    ref = mamba_block_ref(x, params)

    # f32 path with a small tile (tp=8 -> 4 grid steps) to exercise the mod/offset index maps.
    out_f32 = mamba_block(x, params, compute_dtype=jnp.float32, target_pairs=8)
    jax.block_until_ready(out_f32)
    assert out_f32.shape == (2 * bn, d_model)
    assert jnp.allclose(out_f32, ref, rtol=1e-3, atol=1e-4), \
        f"f32 mismatch: max abs err {float(jnp.max(jnp.abs(out_f32 - ref)))}"

    # bf16 MXU path (default tiling); f32 accumulation via preferred_element_type.
    out_bf16 = mamba_block(x, params, compute_dtype=jnp.bfloat16)
    jax.block_until_ready(out_bf16)
    assert jnp.allclose(out_bf16, ref, rtol=5e-2, atol=1e-2), \
        f"bf16 mismatch: max abs err {float(jnp.max(jnp.abs(out_bf16 - ref)))}"

    print("KERNEL_OK")
</pallas_src>

<mosaic_0001>
module attributes {stable_mosaic.version = 11 : i64} {
  func.func @_mamba_kernel(%arg0: i32, %arg1: memref<8x64xf32, #tpu.memory_space<vmem>>, %arg2: memref<8x64xf32, #tpu.memory_space<vmem>>, %arg3: memref<8x128xf32, #tpu.memory_space<vmem>>, %arg4: memref<64x128xf32, #tpu.memory_space<vmem>>, %arg5: memref<1x128xf32, #tpu.memory_space<vmem>>, %arg6: memref<1x128xf32, #tpu.memory_space<vmem>>, %arg7: memref<1x128xf32, #tpu.memory_space<vmem>>, %arg8: memref<1x128xf32, #tpu.memory_space<vmem>>, %arg9: memref<64x64xf32, #tpu.memory_space<vmem>>, %arg10: memref<1x64xf32, #tpu.memory_space<vmem>>, %arg11: memref<128x64xf32, #tpu.memory_space<vmem>>, %arg12: memref<1x64xf32, #tpu.memory_space<vmem>>, %arg13: memref<2x8x128xf32, #tpu.memory_space<vmem>>) attributes {dimension_semantics = [#tpu.dimension_semantics<parallel>], iteration_bounds = array<i64: 4>, scalar_prefetch = 0 : i64, scratch_operands = 0 : i64, tpu.core_type = #tpu.core_type<tc>, window_params = [{transform_indices = @transform_0, window_bounds = array<i64: 8, 64>}, {transform_indices = @transform_1, window_bounds = array<i64: 8, 64>}, {transform_indices = @transform_2, window_bounds = array<i64: 8, 128>}, {pipeline_mode = #tpu.pipeline_mode<synchronous>, transform_indices = @transform_3, window_bounds = array<i64: 64, 128>}, {pipeline_mode = #tpu.pipeline_mode<synchronous>, transform_indices = @transform_4, window_bounds = array<i64: 1, 128>}, {pipeline_mode = #tpu.pipeline_mode<synchronous>, transform_indices = @transform_5, window_bounds = array<i64: 1, 128>}, {pipeline_mode = #tpu.pipeline_mode<synchronous>, transform_indices = @transform_6, window_bounds = array<i64: 1, 128>}, {pipeline_mode = #tpu.pipeline_mode<synchronous>, transform_indices = @transform_7, window_bounds = array<i64: 1, 128>}, {pipeline_mode = #tpu.pipeline_mode<synchronous>, transform_indices = @transform_8, window_bounds = array<i64: 64, 64>}, {pipeline_mode = #tpu.pipeline_mode<synchronous>, transform_indices = @transform_9, window_bounds = array<i64: 1, 64>}, {pipeline_mode = #tpu.pipeline_mode<synchronous>, transform_indices = @transform_10, window_bounds = array<i64: 128, 64>}, {pipeline_mode = #tpu.pipeline_mode<synchronous>, transform_indices = @transform_11, window_bounds = array<i64: 1, 64>}, {transform_indices = @transform_12, window_bounds = array<i64: 2, 8, 128>}]} {
    %c0 = arith.constant 0 : index
    %c0_0 = arith.constant 0 : index
    %0 = vector.load %arg1[%c0, %c0_0] : memref<8x64xf32, #tpu.memory_space<vmem>>, vector<8x64xf32>
    %c0_1 = arith.constant 0 : index
    %c0_2 = arith.constant 0 : index
    %1 = vector.load %arg2[%c0_1, %c0_2] : memref<8x64xf32, #tpu.memory_space<vmem>>, vector<8x64xf32>
    %2 = tpu.concatenate %0, %1 in 0 : vector<8x64xf32>, vector<8x64xf32> -> vector<16x64xf32>
    %c0_3 = arith.constant 0 : index
    %c0_4 = arith.constant 0 : index
    %3 = vector.load %arg4[%c0_3, %c0_4] : memref<64x128xf32, #tpu.memory_space<vmem>>, vector<64x128xf32>
    %cst = arith.constant dense<0.000000e+00> : vector<16x128xf32>
    %4 = tpu.matmul %2, %3, %cst {dimension_numbers = #tpu.dot_dimension_numbers<[1], [0], [0], [1], [0, 0, 1, 1], [], []>} : vector<16x64xf32>, vector<64x128xf32>, vector<16x128xf32> -> vector<16x128xf32>
    %c0_5 = arith.constant 0 : index
    %c0_6 = arith.constant 0 : index
    %5 = vector.load %arg6[%c0_5, %c0_6] : memref<1x128xf32, #tpu.memory_space<vmem>>, vector<1x128xf32>
    %6 = vector.broadcast %5 : vector<1x128xf32> to vector<16x128xf32>
    %7 = arith.mulf %4, %6 : vector<16x128xf32>
    %c0_7 = arith.constant 0 : index
    %c0_8 = arith.constant 0 : index
    %8 = vector.load %arg7[%c0_7, %c0_8] : memref<1x128xf32, #tpu.memory_space<vmem>>, vector<1x128xf32>
    %9 = vector.broadcast %8 : vector<1x128xf32> to vector<16x128xf32>
    %10 = arith.addf %7, %9 : vector<16x128xf32>
    %c0_9 = arith.constant 0 : index
    %c0_10 = arith.constant 0 : index
    %11 = vector.load %arg5[%c0_9, %c0_10] : memref<1x128xf32, #tpu.memory_space<vmem>>, vector<1x128xf32>
    %12 = vector.broadcast %11 : vector<1x128xf32> to vector<16x128xf32>
    %13 = arith.mulf %4, %12 : vector<16x128xf32>
    %c0_11 = arith.constant 0 : index
    %c0_12 = arith.constant 0 : index
    %14 = vector.load %arg8[%c0_11, %c0_12] : memref<1x128xf32, #tpu.memory_space<vmem>>, vector<1x128xf32>
    %15 = vector.broadcast %14 : vector<1x128xf32> to vector<16x128xf32>
    %16 = arith.addf %13, %15 : vector<16x128xf32>
    %c0_13 = arith.constant 0 : index
    %c0_14 = arith.constant 0 : index
    %17 = vector.load %arg3[%c0_13, %c0_14] : memref<8x128xf32, #tpu.memory_space<vmem>>, vector<8x128xf32>
    %18 = vector.extract_strided_slice %17 {offsets = [0, 0], sizes = [8, 64], strides = [1, 1]} : vector<8x128xf32> to vector<8x64xf32>
    %19 = vector.extract_strided_slice %17 {offsets = [0, 64], sizes = [8, 64], strides = [1, 1]} : vector<8x128xf32> to vector<8x64xf32>
    %20 = tpu.concatenate %18, %19 in 0 : vector<8x64xf32>, vector<8x64xf32> -> vector<16x64xf32>
    %c0_15 = arith.constant 0 : index
    %c0_16 = arith.constant 0 : index
    %21 = vector.load %arg9[%c0_15, %c0_16] : memref<64x64xf32, #tpu.memory_space<vmem>>, vector<64x64xf32>
    %cst_17 = arith.constant dense<0.000000e+00> : vector<16x64xf32>
    %22 = tpu.matmul %20, %21, %cst_17 {dimension_numbers = #tpu.dot_dimension_numbers<[1], [0], [0], [1], [0, 0, 1, 1], [], []>} : vector<16x64xf32>, vector<64x64xf32>, vector<16x64xf32> -> vector<16x64xf32>
    %c0_18 = arith.constant 0 : index
    %c0_19 = arith.constant 0 : index
    %23 = vector.load %arg10[%c0_18, %c0_19] : memref<1x64xf32, #tpu.memory_space<vmem>>, vector<1x64xf32>
    %24 = vector.broadcast %23 : vector<1x64xf32> to vector<16x64xf32>
    %25 = arith.addf %22, %24 : vector<16x64xf32>
    %cst_20 = arith.constant 2.000000e+01 : f32
    %26 = vector.broadcast %cst_20 : f32 to vector<16x64xf32>
    %27 = arith.cmpf ogt, %25, %26 : vector<16x64xf32>
    %cst_21 = arith.constant 2.000000e+01 : f32
    %28 = vector.broadcast %cst_21 : f32 to vector<16x64xf32>
    %29 = arith.minimumf %25, %28 : vector<16x64xf32>
    %30 = math.exp %29 : vector<16x64xf32>
    %31 = math.log1p %30 : vector<16x64xf32>
    %32 = arith.select %27, %25, %31 : vector<16x64xi1>, vector<16x64xf32>
    %33 = vector.extract_strided_slice %32 {offsets = [0, 0], sizes = [8, 64], strides = [1, 1]} : vector<16x64xf32> to vector<8x64xf32>
    %34 = vector.extract_strided_slice %32 {offsets = [0, 0], sizes = [8, 64], strides = [1, 1]} : vector<16x64xf32> to vector<8x64xf32>
    %35 = tpu.concatenate %33, %34 in 1 : vector<8x64xf32>, vector<8x64xf32> -> vector<8x128xf32>
    %36 = vector.extract_strided_slice %32 {offsets = [8, 0], sizes = [8, 64], strides = [1, 1]} : vector<16x64xf32> to vector<8x64xf32>
    %37 = vector.extract_strided_slice %32 {offsets = [8, 0], sizes = [8, 64], strides = [1, 1]} : vector<16x64xf32> to vector<8x64xf32>
    %38 = tpu.concatenate %36, %37 in 1 : vector<8x64xf32>, vector<8x64xf32> -> vector<8x128xf32>
    %39 = tpu.concatenate %35, %35, %38, %38 in 0 : vector<8x128xf32>, vector<8x128xf32>, vector<8x128xf32>, vector<8x128xf32> -> vector<32x128xf32>
    %40 = tpu.concatenate %10, %16 in 0 : vector<16x128xf32>, vector<16x128xf32> -> vector<32x128xf32>
    %41 = arith.mulf %40, %39 : vector<32x128xf32>
    %c0_22 = arith.constant 0 : index
    %c0_23 = arith.constant 0 : index
    %42 = vector.load %arg11[%c0_22, %c0_23] : memref<128x64xf32, #tpu.memory_space<vmem>>, vector<128x64xf32>
    %cst_24 = arith.constant dense<0.000000e+00> : vector<32x64xf32>
    %43 = tpu.matmul %41, %42, %cst_24 {dimension_numbers = #tpu.dot_dimension_numbers<[1], [0], [0], [1], [0, 0, 1, 1], [], []>} : vector<32x128xf32>, vector<128x64xf32>, vector<32x64xf32> -> vector<32x64xf32>
    %c0_25 = arith.constant 0 : index
    %c0_26 = arith.constant 0 : index
    %44 = vector.load %arg12[%c0_25, %c0_26] : memref<1x64xf32, #tpu.memory_space<vmem>>, vector<1x64xf32>
    %45 = vector.broadcast %44 : vector<1x64xf32> to vector<32x64xf32>
    %46 = arith.addf %43, %45 : vector<32x64xf32>
    %47 = vector.extract_strided_slice %46 {offsets = [0, 0], sizes = [8, 64], strides = [1, 1]} : vector<32x64xf32> to vector<8x64xf32>
    %48 = vector.extract_strided_slice %46 {offsets = [16, 0], sizes = [8, 64], strides = [1, 1]} : vector<32x64xf32> to vector<8x64xf32>
    %49 = tpu.concatenate %47, %48 in 1 : vector<8x64xf32>, vector<8x64xf32> -> vector<8x128xf32>
    %c0_27 = arith.constant 0 : index
    %c0_28 = arith.constant 0 : index
    %c0_29 = arith.constant 0 : index
    %50 = vector.load %arg13[%c0_27, %c0_28, %c0_29] : memref<2x8x128xf32, #tpu.memory_space<vmem>>, vector<1x8x128xf32>
    %51 = vector.shape_cast %50 : vector<1x8x128xf32> to vector<8x128xf32>
    %52 = vector.shape_cast %49 : vector<8x128xf32> to vector<1x8x128xf32>
    tpu.vector_store %arg13[%c0_27, %c0_28, %c0_29], %52 {strides = array<i32>} : memref<2x8x128xf32, #tpu.memory_space<vmem>>, vector<1x8x128xf32>,
    %53 = vector.extract_strided_slice %46 {offsets = [8, 0], sizes = [8, 64], strides = [1, 1]} : vector<32x64xf32> to vector<8x64xf32>
    %54 = vector.extract_strided_slice %46 {offsets = [24, 0], sizes = [8, 64], strides = [1, 1]} : vector<32x64xf32> to vector<8x64xf32>
    %55 = tpu.concatenate %53, %54 in 1 : vector<8x64xf32>, vector<8x64xf32> -> vector<8x128xf32>
    %c1 = arith.constant 1 : index
    %c0_30 = arith.constant 0 : index
    %c0_31 = arith.constant 0 : index
    %56 = vector.load %arg13[%c1, %c0_30, %c0_31] : memref<2x8x128xf32, #tpu.memory_space<vmem>>, vector<1x8x128xf32>
    %57 = vector.shape_cast %56 : vector<1x8x128xf32> to vector<8x128xf32>
    %58 = vector.shape_cast %55 : vector<8x128xf32> to vector<1x8x128xf32>
    tpu.vector_store %arg13[%c1, %c0_30, %c0_31], %58 {strides = array<i32>} : memref<2x8x128xf32, #tpu.memory_space<vmem>>, vector<1x8x128xf32>,
    return
  }
  func.func @transform_0(%arg0: i32) -> (i32, i32) {
    %c0_i32 = arith.constant 0 : i32
    %c0_i32_0 = arith.constant 0 : i32
    return %arg0, %c0_i32 : i32, i32
  }
  func.func @transform_1(%arg0: i32) -> (i32, i32) {
    %c4_i32 = arith.constant 4 : i32
    %0 = arith.addi %arg0, %c4_i32 : i32
    %c0_i32 = arith.constant 0 : i32
    %c0_i32_0 = arith.constant 0 : i32
    return %0, %c0_i32 : i32, i32
  }
  func.func @transform_2(%arg0: i32) -> (i32, i32) {
    %c0_i32 = arith.constant 0 : i32
    %c0_i32_0 = arith.constant 0 : i32
    return %arg0, %c0_i32 : i32, i32
  }
  func.func @transform_3(%arg0: i32) -> (i32, i32) {
    %c0_i32 = arith.constant 0 : i32
    %c0_i32_0 = arith.constant 0 : i32
    %c0_i32_1 = arith.constant 0 : i32
    return %c0_i32, %c0_i32_0 : i32, i32
  }
  func.func @transform_4(%arg0: i32) -> (i32, i32) {
    %c0_i32 = arith.constant 0 : i32
    %c0_i32_0 = arith.constant 0 : i32
    %c0_i32_1 = arith.constant 0 : i32
    return %c0_i32, %c0_i32_0 : i32, i32
  }
  func.func @transform_5(%arg0: i32) -> (i32, i32) {
    %c0_i32 = arith.constant 0 : i32
    %c0_i32_0 = arith.constant 0 : i32
    %c0_i32_1 = arith.constant 0 : i32
    return %c0_i32, %c0_i32_0 : i32, i32
  }
  func.func @transform_6(%arg0: i32) -> (i32, i32) {
    %c0_i32 = arith.constant 0 : i32
    %c0_i32_0 = arith.constant 0 : i32
    %c0_i32_1 = arith.constant 0 : i32
    return %c0_i32, %c0_i32_0 : i32, i32
  }
  func.func @transform_7(%arg0: i32) -> (i32, i32) {
    %c0_i32 = arith.constant 0 : i32
    %c0_i32_0 = arith.constant 0 : i32
    %c0_i32_1 = arith.constant 0 : i32
    return %c0_i32, %c0_i32_0 : i32, i32
  }
  func.func @transform_8(%arg0: i32) -> (i32, i32) {
    %c0_i32 = arith.constant 0 : i32
    %c0_i32_0 = arith.constant 0 : i32
    %c0_i32_1 = arith.constant 0 : i32
    return %c0_i32, %c0_i32_0 : i32, i32
  }
  func.func @transform_9(%arg0: i32) -> (i32, i32) {
    %c0_i32 = arith.constant 0 : i32
    %c0_i32_0 = arith.constant 0 : i32
    %c0_i32_1 = arith.constant 0 : i32
    return %c0_i32, %c0_i32_0 : i32, i32
  }
  func.func @transform_10(%arg0: i32) -> (i32, i32) {
    %c0_i32 = arith.constant 0 : i32
    %c0_i32_0 = arith.constant 0 : i32
    %c0_i32_1 = arith.constant 0 : i32
    return %c0_i32, %c0_i32_0 : i32, i32
  }
  func.func @transform_11(%arg0: i32) -> (i32, i32) {
    %c0_i32 = arith.constant 0 : i32
    %c0_i32_0 = arith.constant 0 : i32
    %c0_i32_1 = arith.constant 0 : i32
    return %c0_i32, %c0_i32_0 : i32, i32
  }
  func.func @transform_12(%arg0: i32) -> (i32, i32, i32) {
    %c0_i32 = arith.constant 0 : i32
    %c0_i32_0 = arith.constant 0 : i32
    %c0_i32_1 = arith.constant 0 : i32
    return %c0_i32, %arg0, %c0_i32_0 : i32, i32, i32
  }
}

</mosaic_0001>

<bundles_post_ra>
// kernel: tpu_custom_call.1
= control target key start
LH: loop header
LB: loop body
LE: loop exit
PB: predicated region body
PF: predicated region fallthrough
CT: control target
= control target key end

     0   :  { %s1685_s0 = inlined_call_operand.vmem [shape: f32[64,64], index: 0, kind: input, shape index: {}]   ;;  %s1686_s1 = inlined_call_operand.vmem [shape: f32[64,64], index: 1, kind: input, shape index: {}]   ;;  %s1687_s2 = inlined_call_operand.hbm [shape: f32[32,128], index: 2, kind: input, shape index: {}]   ;;  %s1688_s3 = inlined_call_operand.vmem [shape: f32[64,128], index: 3, kind: input, shape index: {}]   ;;  %s1689_s4 = inlined_call_operand.vmem [shape: f32[1,128], index: 4, kind: input, shape index: {}]   ;;  %s1690_s5 = inlined_call_operand.vmem [shape: f32[1,128], index: 5, kind: input, shape index: {}]   ;;  %s1691_s6 = inlined_call_operand.vmem [shape: f32[1,128], index: 6, kind: input, shape index: {}]   ;;  %s1692_s7 = inlined_call_operand.vmem [shape: f32[1,128], index: 7, kind: input, shape index: {}]   ;;  %s1693_s8 = inlined_call_operand.hbm [shape: f32[64,64], index: 8, kind: input, shape index: {}]   ;;  %s1694_s9 = inlined_call_operand.vmem [shape: f32[1,64], index: 9, kind: input, shape index: {}]   ;;  %s1695_s10 = inlined_call_operand.vmem [shape: f32[128,64], index: 10, kind: input, shape index: {}]   ;;  %s1696_s11 = inlined_call_operand.vmem [shape: f32[1,64], index: 11, kind: input, shape index: {}]   ;;  %s1697_s12 = inlined_call_operand.hbm [shape: f32[2,32,128], index: 12, kind: output, shape index: {}]  }
   0x1   :  { %1707 = sst [smem:[#allocation15_spill]] %s1693_s8 }
   0x2   :  { %1708 = sst [smem:[#allocation16_spill]] %s1696_s11 }
   0x3   :  { %1709 = sst [smem:[#allocation17_spill]] %s1697_s12 }
   0x4   :  { %17 = vsyncpa [#allocation3], 0 }
   0x5   :  { %19 = vsyncpa [#allocation3 + $0x1], 0 }
   0x6   :  { %20 = vsyncpa [#allocation6], 0 }
   0x7   :  { %21 = vsyncpa [#allocation4], 0 }
   0x8   :  { %23 = vsyncpa [#allocation4 + $0x1], 0  ;;  %s1406_s21 = smov 0   ;;  %s1408_s22 = smov 0  }
   0x9   :  { %s1410_s23 = smov 0   ;;  %s1412_s24 = smov 0  }
   0xa LB: > { %1710 = sst [smem:[#allocation11_spill]] %s1318_s21  ;;  %s1427_s25 = sadd.s32 4294967295, %s1330_s24   ;;  %s1330_s24 = sphi %s1412_s24, %s1732_s24   ;;  %s1326_s23 = sphi %s1410_s23, %s1736_s23   ;;  %s1322_s22 = sphi %s1408_s22, %s1735_s22   ;;  %s1318_s21 = sphi %s1406_s21, %s1734_s21  }
   0xb   : > { %s994_s26 = sadd.s32 4294967294, %s1330_s24   ;;  %p103_p0 = scmp.ne.s32.totalorder %s1322_s22, %s1318_s21 }
   0xc   : > { %p1703_p1 = scmp.eq.s32.totalorder %s1427_s25, 0  ;;  %p322_p3 = scmp.eq.s32.totalorder %s994_s26, 3 }
   0xd   : > { %p995_p5 = scmp.ge.s32.totalorder %s1330_s24, 1  ;;  %p329_p7 = scmp.lt.s32.totalorder %s1330_s24, 5 }
   0xe   : > { %p1436_p4 = por %p1703_p1, %p103_p0  ;;  %p1441_p6 = por %p322_p3, %p103_p0 }
   0xf   : > { %p1446_p8 = pnand %p995_p5, %p329_p7  ;;  %s1332_s30 = smov [#allocation5]  }
  0x10   : > { %s1711_s27 = scalar_select %p1436_p4, 1, 0 }
  0x11   : > { %s1712_s28 = scalar_select %p1441_p6, 1, 0 }
  0x12   : > { %s1714_s29 = scalar_select %p1446_p8, 1, 0 }
  0x13   : > { %1713 = sst [smem:[#allocation12_spill]] %s1712_s28  ;;  %s356_s13 = sshll.u32 %s1332_s30, 4  ;;  %s357_s13 = int_to_ptr.vmem [resolvable:$true] %s356_s13 }
  0x14   : > { %p1145_p9 = pneg %p1446_p8  ;;  %s1459_s15 = sadd.s32 1, %s1330_s24  }
  0x15   : > { %1716 = sst [smem:[#allocation13_spill]] %s1459_s15  ;;  %s90_s16 = sadd.s32 1, %s1326_s23 }
  0x16   : > { %p1454_p10 = pnand %p1145_p9, %p1703_p1  ;;  %s87_s17 = ssub.s32 %s1330_s24, %s1459_s15 }
  0x17   : > { %s1219_s18 = scalar_lea.vmem %s357_s13, 1024  ;;  %p1227_p3 = scmp.lt.s32.totalorder %s357_s13, %s357_s13 }
  0x18   : > { %p1210_p11 = pneg %p1454_p10  ;;  %p1220_p12 = scmp.ne.s32.totalorder %s357_s13, %s1219_s18 }
  0x19   : > { %p1228_p5 = scmp.lt.s32.totalorder %s1219_s18, %s1219_s18 }
  0x1a   : > { %p1222_p13 = pnand %p1220_p12, %p1210_p11 }
  0x1b   : > { %p1229_p7 = por %p1228_p5, %p1227_p3 }
  0x1c   : > { %p1223_p0 = pneg %p1222_p13 }
  0x1e   : > { %p1230_p2 = pnand %p1229_p7, %p1223_p0 }
  0x20   : > { %1233 = shalt.err (!%p1230_p2)
}
  0x21   : > { %s1333_s19 = smov 128   ;;  %s1334_s20 = smov 8  }
  0x22   : > { %s1717_s8 = sld [smem:[#allocation15_spill]]  ;;  %p88_p9 = scmp.eq.s32.totalorder %s87_s17, 0 }
  0x23   : > { %p97_p11 = scmp.ne.s32.totalorder %s1326_s23, %s1322_s22  ;;  %p98_p12 = scmp.eq.s32.totalorder %s1330_s24, 0 }
  0x24   : > { %p1158_p2 = scmp.lt.s32.totalorder %s1330_s24, 4  ;;  %p1719_p0 = scmp.eq.s32.totalorder %s1427_s25, 3 }
  0x25   : > { %s1476_s18 = scalar_select %p88_p9, %s1326_s23, %s90_s16  }
  0x26   : > { %p99_p13 = por %p98_p12, %p97_p11  ;;  %p1480_p3 = por %p1719_p0, %p97_p11 }
  0x27   : > { %1718 = sst [smem:[#allocation14_spill]] %s1476_s18  ;;  %s395_s28 = sand.u32 1, %s1326_s23  }
  0x28   : > { %1148 = dma.hbm_to_vmem [thread:$0]  (!%p1454_p10), %s1717_s8, 1024, %s357_s13, [#allocation6], %s1333_s19, %s1333_s19, %s1334_s20  }
  0x29   : > { %s1720_s15 = scalar_select %p1480_p3, 1, 0 }
  0x2a   : > { %s999_s21 = sshll.u32 %s1330_s24, 7  ;;  %s998_s12 = sshll.u32 %s395_s28, 3 }
  0x2b   : > { %s1489_s26 = scalar_lea.hbm %s1687_s2, %s999_s21  ;;  %s399_s13 = scalar_lea.vmem [#allocation2], %s998_s12 }
  0x2c   : > { %s406_s16 = sshll.u32 %s399_s13, 4  ;;  %p1491_p10 = pnand %p1158_p2, %p99_p13  ;;  %s407_s16 = int_to_ptr.vmem [resolvable:$true] %s406_s16 }
  0x2d   : > { %s396_s19 = scalar_lea.sflag [#allocation3], %s395_s28  ;;  %s1234_s20 = scalar_lea.hbm %s1489_s26, 128 }
  0x2e   : > { %p1235_p5 = scmp.ne.s32.totalorder %s1489_s26, %s1234_s20  ;;  %p1236_p7 = pneg %p1491_p10 }
  0x2f   : > { %s1239_s30 = scalar_lea.hbm %s1687_s2, 512  ;;  %p1240_p12 = scmp.lt.s32.totalorder %s1489_s26, %s1687_s2 }
  0x30   : > { %p1237_p9 = pnand %p1236_p7, %p1235_p5  ;;  %p1241_p2 = scmp.lt.s32.totalorder %s1239_s30, %s1234_s20 }
  0x32   : > { %p1238_p11 = pneg %p1237_p9  ;;  %p1242_p13 = por %p1241_p2, %p1240_p12 }
  0x34   : > { %p1243_p0 = pnand %p1242_p13, %p1238_p11 }
  0x36   : > { %1246 = shalt.err (!%p1243_p0)
}
  0x37   : > { %s1247_s13 = scalar_lea.vmem %s407_s16, 128  ;;  %s1335_s28 = smov [#allocation2]  }
  0x38   : > { %p1248_p1 = scmp.ne.s32.totalorder %s407_s16, %s1247_s13  ;;  %s1252_s8 = sshll.u32 %s1335_s28, 4  ;;  %s1253_s8 = int_to_ptr.vmem [resolvable:$false] %s1252_s8 }
  0x39   : > { %s1254_s18 = scalar_lea.vmem %s1253_s8, 256  ;;  %p1255_p5 = scmp.lt.s32.totalorder %s407_s16, %s1253_s8 }
  0x3a   : > { %p1250_p6 = pnand %p1248_p1, %p1236_p7  ;;  %p1256_p9 = scmp.lt.s32.totalorder %s1254_s18, %s1247_s13 }
  0x3c   : > { %p1251_p3 = pneg %p1250_p6  ;;  %p1257_p4 = por %p1256_p9, %p1255_p5 }
  0x3e   : > { %p1258_p8 = pnand %p1257_p4, %p1251_p3 }
  0x40   : > { %1261 = shalt.err (!%p1258_p8)
}
  0x41   : > { %1152 = dma.hbm_to_vmem [thread:$0]  (!%p1491_p10), %s1489_s26, 128, %s407_s16, %s396_s19  }
  0x42   : > { %p1722_p11 = scmp.ne.s32.totalorder %s1714_s29, 0 }
  0x43   : > { %s1512_s20 = sand.u32 (!%p1722_p11), 1, %s1322_s22   ;;  %p1723_p1 = scmp.ne.s32.totalorder (!%p1722_p11), %s1711_s27, 0 }
  0x44   : > { %415 = sbr.rel (%p1722_p11) target bundleno = 880 (0x370), region = 68  ;;  %s1001_s11 = sshll.u32 (!%p1722_p11), %s1512_s20, 3 }
  0x45   : > { %s418_s21 = scalar_lea.sflag (!%p1722_p11), [#allocation3], %s1512_s20  ;;  %s421_s8 = scalar_lea.vmem (!%p1722_p11), [#allocation2], %s1001_s11 }
  0x49   : > { %1305 = dma.done.wait (%p1723_p1), %s418_s21, 128  }
  0x4a   : > { %1307 = vsyncadd (%p1723_p1), %s418_s21, 4294967168  ;;  %p1724_p4 = scmp.eq.s32.totalorder %s1427_s25, 0 }
  0x4c   : > { %1309 = dma.done.wait (%p1724_p4), [#allocation6], 1024   ;;  %p1725_p6 = pmov %p1724_p4 }
  0x4d   : > { %p475_p8 = scmp.lt.s32.totalorder %s1427_s25, 7  ;;  %s479_s26 = sadd.s32 4, %s1427_s25  ;;  %v613_v0 = vld [vmem:[%s421_s8] sm:$0xff]  ;;  %v494_v1 = vld [vmem:[%s1688_s3 + $0x38] sm:$0xff]  ;;  %v493_v2 = vld [vmem:[%s1688_s3 + $0x30] sm:$0xff]  ;;  %vm495_vm0 = vcmask 523264  }
  0x4e   : > { %1311 = vsyncadd (%p1725_p6), [#allocation6], 4294966272  ;;  %p480_p3 = scmp.lt.s32.totalorder %s479_s26, 7  ;;  %s1336_s13 = smov 64   ;;  %1061 = vmatprep.subr.mxu1 %v494_v1  ;;  %v492_v3 = vld [vmem:[%s1688_s3 + $0x28] sm:$0xff]  ;;  %v491_v5 = vld [vmem:[%s1688_s3 + $0x20] sm:$0xff] }
  0x4f   : > { %s476_s29 = scalar_select %p475_p8, %s1427_s25, 7  ;;  %615 = vrot.lane.b32.xlu0 %v613_v0, %s1336_s13  ;;  %1062 = vmatpush3.msra.mxu1 %v494_v1  ;;  %v490_v6 = vld [vmem:[%s1688_s3 + $0x18] sm:$0xff]  ;;  %v489_v7 = vld [vmem:[%s1688_s3 + $0x10] sm:$0xff]  ;;  %v488_v8 = vld [vmem:[%s1688_s3 + $0x8] sm:$0xff] }
  0x50   : > { %1063 = vmatprep.subr.mxu1 %v493_v2  ;;  %s1738_s26 = smov (!%p480_p3, %s479_s26), 7  ;;  %v487_v9 = vld [vmem:[%s1688_s3] sm:$0xff]  ;;  %v624_v11 = vld [vmem:[#allocation5 + $0x38] sm:$0xff]  ;;  %v622_v13 = vld [vmem:[#allocation5 + $0x28] sm:$0xff]  ;;  %s1727_s14 = sld [smem:[#allocation17_spill]] }
  0x51   : > { %s1004_s18 = sshll.u32 %s476_s29, 3  ;;  %1064 = vmatpush3.msra.mxu1 %v493_v2  ;;  %s1005_s27 = sshll.u32 %s1738_s26, 3  ;;  %v623_v12 = vld [vmem:[#allocation5 + $0x30] sm:$0xff]  ;;  %v621_v14 = vld [vmem:[#allocation5 + $0x20] sm:$0xff]  ;;  %v620_v15 = vld [vmem:[#allocation5 + $0x18] sm:$0xff] }
  0x52   : > { %s478_s12 = scalar_lea.vmem %s1685_s0, %s1004_s18  ;;  %1065 = vmatprep.subr.mxu1 %v492_v3  ;;  %s483_s28 = scalar_lea.vmem %s1686_s1, %s1005_s27  ;;  %v619_v16 = vld [vmem:[#allocation5 + $0x10] sm:$0xff]  ;;  %v618_v17 = vld [vmem:[#allocation5 + $0x8] sm:$0xff]  ;;  %v617_v18 = vld [vmem:[#allocation5] sm:$0xff] }
  0x53   : > { %v485_v4 = vld [vmem:[%s478_s12] sm:$0xff]  ;;  %1066 = vmatpush3.msra.mxu1 %v492_v3  ;;  %v768_v20 = vld [vmem:[%s1695_s10 + $0x78] sm:$0xff]  ;;  %v767_v21 = vld [vmem:[%s1695_s10 + $0x70] sm:$0xff]  ;;  %s1726_s29 = sld [smem:[#allocation16_spill]]  ;;  %s1003_s18 = sshll.u32 %s1512_s20, 4 }
  0x54   : > { %1077 = vmatprep.mubr.msk.f32.mxu1 %vm495_vm0, %v485_v4  ;;  %1067 = vmatprep.subr.mxu1 %v491_v5  ;;  %v486_v10 = vld [vmem:[%s483_s28] sm:$0xff]  ;;  %v766_v22 = vld [vmem:[%s1695_s10 + $0x68] sm:$0xff]  ;;  %v764_v24 = vld [vmem:[%s1695_s10 + $0x58] sm:$0xff]  ;;  %s474_s16 = scalar_lea.vmem [#allocation7], %s1003_s18  ;;  %s1018_s27 = sshll.u32 %s1427_s25, 7 }
  0x55   : > { %1068 = vmatpush3.msra.mxu1 %v491_v5  ;;  %1099 = vmatprep.subr.mxu0 %v768_v20  ;;  %v765_v23 = vld [vmem:[%s1695_s10 + $0x60] sm:$0xff]  ;;  %v763_v25 = vld [vmem:[%s1695_s10 + $0x50] sm:$0xff]  ;;  %v762_v26 = vld [vmem:[%s1695_s10 + $0x48] sm:$0xff]  ;;  %s887_s17 = sshll.u32 %s474_s16, 4  ;;  %p1728_p7 = scmp.ne.s32.totalorder %s1720_s15, 0  ;;  %s1636_s17 = int_to_ptr.vmem [resolvable:$true] %s887_s17 }
  0x56   : > { %1069 = vmatprep.subr.mxu1 %v490_v6  ;;  %1100 = vmatpush3.msra.mxu0 %v768_v20  ;;  %v761_v27 = vld [vmem:[%s1695_s10 + $0x40] sm:$0xff]  ;;  %v760_v28 = vld [vmem:[%s1695_s10 + $0x38] sm:$0xff]  ;;  %v759_v29 = vld [vmem:[%s1695_s10 + $0x30] sm:$0xff]  ;;  %s1642_s12 = scalar_lea.hbm %s1727_s14, %s1018_s27  ;;  %s1262_s25 = scalar_lea.vmem %s1636_s17, 256 }
  0x57   : > { %1070 = vmatpush3.msra.mxu1 %v490_v6  ;;  %1101 = vmatprep.subr.mxu0 %v767_v21  ;;  %v758_v30 = vld [vmem:[%s1695_s10 + $0x28] sm:$0xff]  ;;  %v757_v31 = vld [vmem:[%s1695_s10 + $0x20] sm:$0xff]  ;;  %v756_v32 = vld [vmem:[%s1695_s10 + $0x18] sm:$0xff]  ;;  %p1263_p10 = scmp.ne.s32.totalorder %s1636_s17, %s1262_s25  ;;  %s1337_s28 = smov [#allocation7]  }
  0x58   : > { %1071 = vmatprep.subr.mxu1 %v489_v7  ;;  %1102 = vmatpush3.msra.mxu0 %v767_v21  ;;  %v1012_v35 = vld [vmem:[%s1694_s9] ss:$0 sm:$0xff]  ;;  %v755_v48 = vld [vmem:[%s1695_s10 + $0x10] sm:$0xff]  ;;  %v754_v50 = vld [vmem:[%s1695_s10 + $0x8] sm:$0xff]  ;;  %s1266_s11 = sshll.u32 %s1337_s28, 4  ;;  %s1267_s11 = int_to_ptr.vmem [resolvable:$false] %s1266_s11 }
  0x59   : > { %1072 = vmatpush3.msra.mxu1 %v489_v7  ;;  %1103 = vmatprep.subr.mxu0 %v766_v22  ;;  %v753_v51 = vld [vmem:[%s1695_s10] sm:$0xff]  ;;  %p1264_p12 = pnand %p1263_p10, %p1728_p7  ;;  %s1268_s21 = scalar_lea.vmem %s1267_s11, 512 }
  0x5a   : > { %1073 = vmatprep.subr.mxu1 %v488_v8  ;;  %1104 = vmatpush3.msra.mxu0 %v766_v22  ;;  %v1008_v3 = vld [vmem:[%s1690_s5] ss:$0 sm:$0xff]  ;;  %p1269_p13 = scmp.lt.s32.totalorder %s1636_s17, %s1267_s11  ;;  %p1270_p0 = scmp.lt.s32.totalorder %s1268_s21, %s1262_s25 }
  0x5b   : > { %1074 = vmatpush3.msra.mxu1 %v488_v8  ;;  %1105 = vmatprep.subr.mxu0 %v765_v23  ;;  %v1010_v4 = vld [vmem:[%s1689_s4] ss:$0 sm:$0xff]  ;;  %p1265_p2 = pneg %p1264_p12 }
  0x5c   : > { %1075 = vmatprep.subr.mxu1 %v487_v9  ;;  %1106 = vmatpush3.msra.mxu0 %v765_v23  ;;  %v1009_v7 = vld [vmem:[%s1691_s6] ss:$0 sm:$0xff]  ;;  %p1271_p5 = por %p1270_p0, %p1269_p13 }
  0x5d   : > { %1076 = vmatpush3.msra.mxu1 %v487_v9  ;;  %1107 = vmatprep.subr.mxu0 %v764_v24  ;;  %v1015_v23 = vld [vmem:[%s1726_s29] ss:$0 sm:$0xff] }
  0x5e   : > { %1078 = vmatmul.mubr.msk.f32.vlgmr.msra.gmra.mxu1 %vm495_vm0, %v486_v10  ;;  %1080 = vmatprep.subr.mxu1 %v624_v11  ;;  %v1011_v10 = vld [vmem:[%s1692_s7] ss:$0 sm:$0xff]  ;;  %p1272_p9 = pnand %p1271_p5, %p1265_p2 }
  0x5f   : > { %1081 = vmatpush3.msra.mxu1 %v624_v11  ;;  %1096 = vmatprep.mubr.msk.f32.mxu1 %vm495_vm0, %v613_v0 }
  0x60   : > { %1082 = vmatprep.subr.mxu1 %v623_v12  ;;  %1108 = vmatpush3.msra.mxu0 %v764_v24 }
  0x61   : > { %1083 = vmatpush3.msra.mxu1 %v623_v12  ;;  %1109 = vmatprep.subr.mxu0 %v763_v25 }
  0x62   : > { %1084 = vmatprep.subr.mxu1 %v622_v13  ;;  %1110 = vmatpush3.msra.mxu0 %v763_v25 }
  0x63   : > { %1085 = vmatpush3.msra.mxu1 %v622_v13  ;;  %1111 = vmatprep.subr.mxu0 %v762_v26 }
  0x64   : > { %1086 = vmatprep.subr.mxu1 %v621_v14  ;;  %1112 = vmatpush3.msra.mxu0 %v762_v26 }
  0x65   : > { %1087 = vmatpush3.msra.mxu1 %v621_v14  ;;  %1113 = vmatprep.subr.mxu0 %v761_v27 }
  0x66   : > { %1088 = vmatprep.subr.mxu1 %v620_v15  ;;  %1114 = vmatpush3.msra.mxu0 %v761_v27 }
  0x67   : > { %1089 = vmatpush3.msra.mxu1 %v620_v15  ;;  %1115 = vmatprep.subr.mxu0 %v760_v28 }
  0x68   : > { %1090 = vmatprep.subr.mxu1 %v619_v16  ;;  %1116 = vmatpush3.msra.mxu0 %v760_v28 }
  0x69   : > { %1091 = vmatpush3.msra.mxu1 %v619_v16  ;;  %1117 = vmatprep.subr.mxu0 %v759_v29 }
  0x6a   : > { %1092 = vmatprep.subr.mxu1 %v618_v17  ;;  %1118 = vmatpush3.msra.mxu0 %v759_v29 }
  0x6b   : > { %1093 = vmatpush3.msra.mxu1 %v618_v17  ;;  %1119 = vmatprep.subr.mxu0 %v758_v30 }
  0x6c   : > { %1094 = vmatprep.subr.mxu1 %v617_v18  ;;  %1120 = vmatpush3.msra.mxu0 %v758_v30 }
  0x6d   : > { %1095 = vmatpush3.msra.mxu1 %v617_v18  ;;  %1121 = vmatprep.subr.mxu0 %v757_v31 }
  0x6e   : > { %1122 = vmatpush3.msra.mxu0 %v757_v31 }
  0x6f   : > { %1123 = vmatprep.subr.mxu0 %v756_v32 }
  0x70   : > { %1124 = vmatpush3.msra.mxu0 %v756_v32 }
  0x71   : > { %1125 = vmatprep.subr.mxu0 %v755_v48 }
  0x72   : > { %1126 = vmatpush3.msra.mxu0 %v755_v48 }
  0x73   : > { %1127 = vmatprep.subr.mxu0 %v754_v50 }
  0x74   : > { %1128 = vmatpush3.msra.mxu0 %v754_v50 }
  0x75   : > { %1129 = vmatprep.subr.mxu0 %v753_v51 }
  0x76   : > { %1130 = vmatpush3.msra.mxu0 %v753_v51 }
  0xc1   : > { %v616_v19 = vpop.permute.xlu0 %615 }
  0xc2   : > { %1097 = vmatmul.mubr.msk.f32.vlgmr.msra.gmra.mxu1 %vm495_vm0, %v616_v19 }
 0x11e   : > { %v1079_v33 = vpop.f32.mrf.mxu1 }
 0x11f   : > { %v585_v5 = vmul.f32 %v1079_v33, %v1008_v3  ;;  %v603_v14 = vmul.f32 %v1079_v33, %v1010_v4 }
 0x120   : > { %v568_v34 = vpop.f32.mrf.mxu1 }
 0x121   : > { %v584_v6 = vmul.f32 %v1008_v3, %v568_v34  ;;  %v602_v8 = vmul.f32 %v1010_v4, %v568_v34  ;;  %v594_v13 = vadd.f32 %v1009_v7, %v585_v5  ;;  %v612_v21 = vadd.f32 %v1011_v10, %v603_v14 }
 0x123   : > { %v593_v12 = vadd.f32 %v1009_v7, %v584_v6  ;;  %v611_v17 = vadd.f32 %v1011_v10, %v602_v8 }
 0x182   : > { %v1098_v36 = vpop.f32.mrf.mxu1 }
 0x183   : > { %v708_v37 = vadd.f32 %v1098_v36, %v1012_v35 }
 0x184   : > { %v702_v38 = vpop.f32.mrf.mxu1 }
 0x185   : > { %v714_v39 = vmin.f32 %v708_v37, 20.0  ;;  %v703_v40 = vadd.f32 %v1012_v35, %v702_v38  ;;  %vm712_vm2 = vcmp.gt.f32.partialorder %v708_v37, 20.0 }
 0x187   : > { %v717_v41 = vmul.f32 1.442695, %v714_v39  ;;  %v713_v42 = vmin.f32 %v703_v40, 20.0  ;;  %vm711_vm4 = vcmp.gt.f32.partialorder %v703_v40, 20.0 }
 0x189   : > { %1200 = vpow2.f32 %v717_v41  ;;  %v715_v43 = vmul.f32 1.442695, %v713_v42 }
 0x18b   : > { %1202 = vpow2.f32 %v715_v43 }
 0x196   : > { %v1201_v44 = vpop.eup %1200 }
 0x197   : > { %v728_v45 = vadd.f32 1.0, %v1201_v44  ;;  %v731_v49 = vmul.f32 -0.5, %v1201_v44  ;;  %v734_v54 = vand.u32 2147483647, %v1201_v44 }
 0x198   : > { %v1203_v46 = vpop.eup %1202 }
 0x199   : > { %1204 = vlog2.f32 %v728_v45  ;;  %v719_v47 = vadd.f32 1.0, %v1203_v46  ;;  %v722_v52 = vmul.f32 -0.5, %v1203_v46  ;;  %v732_v53 = vadd.f32 1.0, %v731_v49 }
 0x19a   : > { %v725_v57 = vand.u32 2147483647, %v1203_v46  ;;  %vm735_vm1 = vcmp.lt.f32.partialorder %v734_v54, 0.0004427343 }
 0x19b   : > { %1206 = vlog2.f32 %v719_v47  ;;  %v723_v55 = vadd.f32 1.0, %v722_v52  ;;  %v733_v59 = vmul.f32 %v1201_v44, %v732_v53 }
 0x19c   : > { %vm726_vm3 = vcmp.lt.f32.partialorder %v725_v57, 0.0004427343 }
 0x19d   : > { %v724_v63 = vmul.f32 %v1203_v46, %v723_v55 }
 0x1a6   : > { %v1205_v56 = vpop.eup %1204 }
 0x1a7   : > { %v730_v58 = vmul.f32 0.6931472, %v1205_v56 }
 0x1a8   : > { %v1207_v60 = vpop.eup %1206 }
 0x1a9   : > { %v736_v61 = vsel %vm735_vm1, %v733_v59, %v730_v58  ;;  %v721_v62 = vmul.f32 0.6931472, %v1207_v60 }
 0x1aa   : > { %v738_v0 = vsel %vm712_vm2, %v708_v37, %v736_v61 }
 0x1ab   : > { %745 = vrot.lane.b32.xlu1 %v738_v0, %s1336_s13  ;;  %v727_v1 = vsel %vm726_vm3, %v724_v63, %v721_v62 }
 0x1ac   : > { %v737_v2 = vsel %vm711_vm4, %v703_v40, %v727_v1 }
 0x1ad   : > { %740 = vrot.lane.b32.xlu0 %v737_v2, %s1336_s13 }
 0x21d   : > { %v746_v9 = vpop.permute.xlu1 %745 }
 0x21e   : > { %v748_v15 = vsel %vm495_vm0, %v738_v0, %v746_v9 }
 0x21f   : > { %v741_v11 = vpop.permute.xlu0 %740  ;;  %v751_v20 = vmul.f32 %v748_v15, %v611_v17  ;;  %v752_v22 = vmul.f32 %v748_v15, %v612_v21 }
 0x220   : > { %v743_v16 = vsel %vm495_vm0, %v737_v2, %v741_v11 }
 0x221   : > { %v749_v18 = vmul.f32 %v743_v16, %v593_v12  ;;  %v750_v19 = vmul.f32 %v743_v16, %v594_v13 }
 0x223   : > { %1131 = vmatprep.mubr.f32.mxu0 %v749_v18 }
 0x224   : > { %1132 = vmatmul.mubr.f32.vlgmr.msra.gmra.mxu0 %v750_v19 }
 0x225   : > { %1134 = vmatprep.mubr.f32.mxu0 %v751_v20 }
 0x228   : > { %1135 = vmatmul.mubr.f32.gmra.mxu0 %v752_v22 }
 0x2e4   : > { %v1133_v24 = vpop.f32.mrf.mxu0 }
 0x2e5   : > { %v848_v25 = vadd.f32 %v1133_v24, %v1015_v23 }
 0x2e6   : > { %v842_v26 = vpop.f32.mrf.mxu0 }
 0x2e7   : > { %v843_v27 = vadd.f32 %v1015_v23, %v842_v26 }
 0x2e8   : > { %v1136_v28 = vpop.f32.mrf.mxu0 }
 0x2e9   : > { %v858_v29 = vadd.f32 %v1136_v28, %v1015_v23 }
 0x2ea   : > { %v852_v30 = vpop.f32.mrf.mxu0 }
 0x2eb   : > { %v853_v31 = vadd.f32 %v1015_v23, %v852_v30  ;;  %868 = vrot.lane.b32.xlu0 %v858_v29, %s1336_s13 }
 0x2ed   : > { %862 = vrot.lane.b32.xlu1 %v853_v31, %s1336_s13  ;;  %s875_s13 = scalar_lea.sflag [#allocation4], %s1512_s20 }
 0x35d   : > { %v869_v32 = vpop.permute.xlu0 %868 }
 0x35e   : > { %v871_v33 = vsel %vm495_vm0, %v848_v25, %v869_v32 }
 0x35f   : > { %1016 = vst [vmem:[%s474_s16 + $0x8] sm:$0xff] %v871_v33  ;;  %v863_v34 = vpop.permute.xlu1 %862 }
 0x360   : > { %v865_v35 = vsel %vm495_vm0, %v843_v27, %v863_v34 }
 0x361   : > { %866 = vst [vmem:[%s474_s16] sm:$0xff] %v865_v35 }
 0x362   : > { %1275 = shalt.err (!%p1272_p9)
}
 0x363   : > { %s1276_s26 = scalar_lea.hbm %s1642_s12, 256  ;;  %s1280_s18 = scalar_lea.hbm %s1727_s14, 1024 }
 0x364   : > { %p1277_p11 = scmp.ne.s32.totalorder %s1642_s12, %s1276_s26  ;;  %p1281_p6 = scmp.lt.s32.totalorder %s1642_s12, %s1727_s14 }
 0x365   : > { %p1282_p8 = scmp.lt.s32.totalorder %s1280_s18, %s1276_s26 }
 0x366   : > { %p1278_p1 = pnand %p1277_p11, %p1728_p7 }
 0x367   : > { %p1283_p3 = por %p1282_p8, %p1281_p6 }
 0x368   : > { %p1279_p4 = pneg %p1278_p1 }
 0x36a   : > { %p1284_p10 = pnand %p1283_p3, %p1279_p4 }
 0x36c   : > { %1287 = shalt.err (!%p1284_p10)
}
 0x36d   : > { %s1338_s19 = smov 128   ;;  %s1339_s30 = smov 512  }
 0x36e   : > { %s1340_s25 = smov 8  }
 0x36f   : > { %1143 = dma.vmem_to_hbm [thread:$0]  (%p1728_p7), %s1636_s17, 256, %s1642_s12, %s875_s13, %s1338_s19, %s1339_s30, %s1340_s25  }
 0x370 PF: > { %s1729_s28 = sld [smem:[#allocation11_spill]]  ;;  %p1160_p12 = scmp.ge.s32.totalorder %s1330_s24, 2 }
 0x371   : > { %s1730_s11 = sld [smem:[#allocation12_spill]] }
 0x376   : > { %s902_s21 = sand.u32 1, %s1729_s28  }
 0x377   : > { %p1731_p2 = scmp.ne.s32.totalorder %s1730_s11, 0  ;;  %s903_s26 = scalar_lea.sflag [#allocation4], %s902_s21 }
 0x379   : > { %p1154_p13 = pnand %p1160_p12, %p1731_p2 }
 0x37b   : > { %p1155_p0 = pneg %p1154_p13 }
 0x37d   : > { %1313 = dma.done.wait (%p1155_p0), %s903_s26, 256  }
 0x37e   : > { %1315 = vsyncadd (%p1155_p0), %s903_s26, 4294967040  ;;  %s1732_s24 = sld [smem:[#allocation13_spill]]  ;;  %s1734_s21 = smov %s1322_s22 }
 0x37f   : > { %s1733_s8 = sld [smem:[#allocation14_spill]]  ;;  %s1735_s22 = smov %s1326_s23 }
 0x384   : > { %p26_p5 = scmp.ge.s32.totalorder %s1732_s24, 6  }
 0x385   : > { %s1736_s23 = smov %s1733_s8 }
 0x386   :  { %28 = sbr.rel (!%p26_p5) target bundleno = 10 (0xa), region = 124 }
 0x38b   :  { %908 = vsyncpa [#allocation3], 1 }
 0x38c   :  { %910 = vsyncpa [#allocation3 + $0x1], 1 }
 0x38d   :  { %911 = vsyncpa [#allocation6], 1 }
 0x38e   :  { %912 = vsyncpa [#allocation4], 1 }
 0x38f   :  { %914 = vsyncpa [#allocation4 + $0x1], 1 }

</bundles_post_ra>
